<compile_context>
chip_gen: v7x
topology: tpu7x:2x2x1
jax: 0.10.0
libtpu: 0.0.40
codegen_flags: <defaults>
</compile_context>

<pallas_src>
import functools

import jax
import jax.numpy as jnp
from jax.experimental import pallas as pl
from jax.experimental.pallas import tpu as pltpu


def _round_up(x, m):
    return (x + m - 1) // m * m


def _uniform01(shape):
    """Uniform [0,1) draws from the TPU hardware PRNG (24-bit mantissa)."""
    bits = pltpu.prng_random_bits(shape)
    return (bits & 0xFFFFFF).astype(jnp.float32) * (1.0 / float(1 << 24))


def _mlp_kernel(seed_ref, x_ref, w1_ref, b1_ref, w2_ref, b2_ref, w3_ref, b3_ref,
                o_ref, h1_acc, *, training: bool, p_in: float, p_hid: float):
    i = pl.program_id(0)            # batch tile
    k = pl.program_id(1)            # input-feature (reduction) tile
    nk = pl.num_programs(1)

    @pl.when(k == 0)
    def _():
        h1_acc[...] = jnp.zeros_like(h1_acc)

    x = x_ref[...]

    if training:
        # TODO(synk): training-mode dropout uses the TPU hardware PRNG; it is
        # statistically equivalent but not bit-identical to torch's RNG stream.
        pltpu.prng_seed(seed_ref[0] + i * nk + k)       # unique seed per tile
        keep0 = _uniform01(x.shape) >= p_in             # keep with prob 1-p
        scale0 = jnp.asarray(1.0 / (1.0 - p_in), x.dtype)
        x = jnp.where(keep0, x * scale0, jnp.zeros_like(x))

    # Partial Linear(input_size, 256) over this K slice; bf16 MXU, f32 accum.
    h1_acc[...] += jnp.dot(x.astype(jnp.bfloat16), w1_ref[...],
                           preferred_element_type=jnp.float32)

    @pl.when(k == nk - 1)
    def _():
        h1 = jnp.maximum(h1_acc[...] + b1_ref[...].astype(jnp.float32), 0.0)

        if training:
            keep1 = _uniform01(h1.shape) >= p_hid
            h1 = jnp.where(keep1, h1 * (1.0 / (1.0 - p_hid)), 0.0)

        # Linear(256, 256) + ReLU
        h2 = jnp.dot(h1.astype(jnp.bfloat16), w2_ref[...],
                     preferred_element_type=jnp.float32)
        h2 = jnp.maximum(h2 + b2_ref[...].astype(jnp.float32), 0.0)

        # Linear(256, num_classes)  (lane-padded to 128 columns)
        out = jnp.dot(h2.astype(jnp.bfloat16), w3_ref[...],
                      preferred_element_type=jnp.float32)
        o_ref[...] = (out + b3_ref[...].astype(jnp.float32)).astype(o_ref.dtype)


def regnn_dropout_forward(x, params, *, training: bool = False,
                          tb: int = 256, tk: int = 512):
    """Forward pass of RegNN_dropout.

    x: (B, ...) any trailing shape; flattened to (B, input_size).
    params: dict with w1 (F,256) bf16, b1 (1,256) f32, w2 (256,256) bf16,
            b2 (1,256) f32, w3 (256,C) bf16, b3 (1,C) f32, seed (1,) int32.
    """
    B = x.shape[0]
    x2d = x.reshape(B, -1)                        # glue: x.view(B, -1), no dtype cast
    F = x2d.shape[1]
    H = params["w1"].shape[1]
    C = params["w3"].shape[1]

    TB = min(tb, _round_up(B, 8))                 # batch tile (sublane-aligned)
    Bp = _round_up(B, TB)
    TK = min(tk, _round_up(F, 128))               # feature (reduction) tile
    Fp = _round_up(F, TK)
    Cp = _round_up(C, 128)                        # lane-dense output block

    if (Bp, Fp) != (B, F):
        x2d = jnp.pad(x2d, ((0, Bp - B), (0, Fp - F)))

    w1 = params["w1"]
    if Fp != F:
        w1 = jnp.pad(w1, ((0, Fp - F), (0, 0)))   # zero rows: no effect on matmul
    w3, b3 = params["w3"], params["b3"]
    if Cp != C:
        w3 = jnp.pad(w3, ((0, 0), (0, Cp - C)))
        b3 = jnp.pad(b3, ((0, 0), (0, Cp - C)))

    kernel = functools.partial(_mlp_kernel, training=training, p_in=0.2, p_hid=0.5)

    out = pl.pallas_call(
        kernel,
        out_shape=jax.ShapeDtypeStruct((Bp, Cp), jnp.float32),
        grid=(Bp // TB, Fp // TK),
        in_specs=[
            pl.BlockSpec(memory_space=pltpu.SMEM),          # seed (scalar, SMEM)
            pl.BlockSpec((TB, TK), lambda i, k: (i, k)),    # x tile
            pl.BlockSpec((TK, H), lambda i, k: (k, 0)),     # w1 K-slice
            pl.BlockSpec((1, H),  lambda i, k: (0, 0)),     # b1 (resident)
            pl.BlockSpec((H, H),  lambda i, k: (0, 0)),     # w2 (resident)
            pl.BlockSpec((1, H),  lambda i, k: (0, 0)),     # b2 (resident)
            pl.BlockSpec((H, Cp), lambda i, k: (0, 0)),     # w3 (resident, padded)
            pl.BlockSpec((1, Cp), lambda i, k: (0, 0)),     # b3 (resident, padded)
        ],
        out_specs=pl.BlockSpec((TB, Cp), lambda i, k: (i, 0)),
        scratch_shapes=[pltpu.VMEM((TB, H), jnp.float32)],  # h1 accumulator
        compiler_params=pltpu.CompilerParams(
            dimension_semantics=("parallel", "arbitrary"),
            vmem_limit_bytes=32 * 1024 * 1024),
    )(params["seed"], x2d, w1, params["b1"], params["w2"], params["b2"], w3, b3)

    return out[:B, :C]


def init_params(key, input_size, num_classes, hidden=256):
    """nn.Linear-style U(-1/sqrt(fan_in), 1/sqrt(fan_in)) init; weights in bf16."""
    def linear(k, fan_in, fan_out):
        kw, kb = jax.random.split(k)
        bound = 1.0 / jnp.sqrt(fan_in)
        w = jax.random.uniform(kw, (fan_in, fan_out), jnp.float32, -bound, bound)
        b = jax.random.uniform(kb, (1, fan_out), jnp.float32, -bound, bound)
        return w.astype(jnp.bfloat16), b                    # bf16 weights, f32 bias

    k1, k2, k3 = jax.random.split(key, 3)
    w1, b1 = linear(k1, input_size, hidden)
    w2, b2 = linear(k2, hidden, hidden)
    w3, b3 = linear(k3, hidden, num_classes)
    return {
        "w1": w1, "b1": b1,
        "w2": w2, "b2": b2,
        "w3": w3, "b3": b3,
        "seed": jnp.array([0], dtype=jnp.int32),
    }


def _reference(x, params):
    """Plain-JAX eval-mode reference (same bf16-input / f32-accum math)."""
    x2d = x.reshape(x.shape[0], -1)

    def dot(a, w):
        return jnp.dot(a.astype(jnp.bfloat16), w, preferred_element_type=jnp.float32)

    h1 = jnp.maximum(dot(x2d, params["w1"]) + params["b1"], 0.0)
    h2 = jnp.maximum(dot(h1, params["w2"]) + params["b2"], 0.0)
    return dot(h2, params["w3"]) + params["b3"]


if __name__ == "__main__":
    key = jax.random.PRNGKey(0)
    kx, kp = jax.random.split(key)

    # Small image-like input: B=2, C=4, H=W=16  ->  input_size = 1024
    B, Cch, Himg, Wimg = 2, 4, 16, 16
    num_classes = 10
    input_size = Cch * Himg * Wimg

    x = jax.random.normal(kx, (B, Cch, Himg, Wimg), jnp.float32)
    params = init_params(kp, input_size, num_classes)

    # Eval-mode forward (dropout = identity), matching module.eval() semantics.
    out = regnn_dropout_forward(x, params, training=False)
    out = jax.block_until_ready(out)

    ref = _reference(x, params)
    assert out.shape == (B, num_classes)
    assert jnp.allclose(out, ref, atol=2e-3, rtol=2e-3), "mismatch vs JAX reference"

    print("KERNEL_OK")
</pallas_src>

<mosaic_0001>
module attributes {stable_mosaic.version = 11 : i64} {
  func.func @_mlp_kernel(%arg0: i32, %arg1: i32, %arg2: memref<1xi32, #tpu.memory_space<smem>>, %arg3: memref<8x512xf32, #tpu.memory_space<vmem>>, %arg4: memref<512x256xbf16, #tpu.memory_space<vmem>>, %arg5: memref<1x256xf32, #tpu.memory_space<vmem>>, %arg6: memref<256x256xbf16, #tpu.memory_space<vmem>>, %arg7: memref<1x256xf32, #tpu.memory_space<vmem>>, %arg8: memref<256x128xbf16, #tpu.memory_space<vmem>>, %arg9: memref<1x128xf32, #tpu.memory_space<vmem>>, %arg10: memref<8x128xf32, #tpu.memory_space<vmem>>, %arg11: memref<8x256xf32, #tpu.memory_space<vmem>>) attributes {dimension_semantics = [#tpu.dimension_semantics<parallel>, #tpu.dimension_semantics<arbitrary>], iteration_bounds = array<i64: 1, 2>, scalar_prefetch = 0 : i64, scratch_operands = 1 : i64, tpu.core_type = #tpu.core_type<tc>, window_params = [{transform_indices = @transform_0, window_bounds = array<i64: 1>}, {transform_indices = @transform_1, window_bounds = array<i64: 8, 512>}, {transform_indices = @transform_2, window_bounds = array<i64: 512, 256>}, {pipeline_mode = #tpu.pipeline_mode<synchronous>, transform_indices = @transform_3, window_bounds = array<i64: 1, 256>}, {pipeline_mode = #tpu.pipeline_mode<synchronous>, transform_indices = @transform_4, window_bounds = array<i64: 256, 256>}, {pipeline_mode = #tpu.pipeline_mode<synchronous>, transform_indices = @transform_5, window_bounds = array<i64: 1, 256>}, {pipeline_mode = #tpu.pipeline_mode<synchronous>, transform_indices = @transform_6, window_bounds = array<i64: 256, 128>}, {pipeline_mode = #tpu.pipeline_mode<synchronous>, transform_indices = @transform_7, window_bounds = array<i64: 1, 128>}, {transform_indices = @transform_8, window_bounds = array<i64: 8, 128>}]} {
    %c0_i32 = arith.constant 0 : i32
    %0 = arith.cmpi eq, %arg1, %c0_i32 : i32
    %1 = arith.extui %0 : i1 to i32
    %c0_i32_0 = arith.constant 0 : i32
    %2 = arith.cmpi ne, %1, %c0_i32_0 : i32
    scf.if %2 {
      %cst_9 = arith.constant 0.000000e+00 : f32
      %13 = vector.broadcast %cst_9 : f32 to vector<8x256xf32>
      %c0_10 = arith.constant 0 : index
      %c0_11 = arith.constant 0 : index
      %14 = vector.load %arg11[%c0_10, %c0_11] : memref<8x256xf32, #tpu.memory_space<vmem>>, vector<8x256xf32>
      tpu.vector_store %arg11[%c0_10, %c0_11], %13 {strides = array<i32>} : memref<8x256xf32, #tpu.memory_space<vmem>>, vector<8x256xf32>,
    } else {
    }
    %c0 = arith.constant 0 : index
    %c0_1 = arith.constant 0 : index
    %3 = vector.load %arg3[%c0, %c0_1] : memref<8x512xf32, #tpu.memory_space<vmem>>, vector<8x512xf32>
    %c0_2 = arith.constant 0 : index
    %c0_3 = arith.constant 0 : index
    %4 = vector.load %arg11[%c0_2, %c0_3] : memref<8x256xf32, #tpu.memory_space<vmem>>, vector<8x256xf32>
    %5 = arith.truncf %3 : vector<8x512xf32> to vector<8x512xbf16>
    %c0_4 = arith.constant 0 : index
    %c0_5 = arith.constant 0 : index
    %6 = vector.load %arg4[%c0_4, %c0_5] : memref<512x256xbf16, #tpu.memory_space<vmem>>, vector<512x256xbf16>
    %cst = arith.constant dense<0.000000e+00> : vector<8x256xf32>
    %7 = tpu.matmul %5, %6, %cst {dimension_numbers = #tpu.dot_dimension_numbers<[1], [0], [0], [1], [0, 0, 1, 1], [], []>} : vector<8x512xbf16>, vector<512x256xbf16>, vector<8x256xf32> -> vector<8x256xf32>
    %8 = arith.addf %4, %7 : vector<8x256xf32>
    %c0_6 = arith.constant 0 : index
    %c0_7 = arith.constant 0 : index
    %9 = vector.load %arg11[%c0_6, %c0_7] : memref<8x256xf32, #tpu.memory_space<vmem>>, vector<8x256xf32>
    tpu.vector_store %arg11[%c0_6, %c0_7], %8 {strides = array<i32>} : memref<8x256xf32, #tpu.memory_space<vmem>>, vector<8x256xf32>,
    %c1_i32 = arith.constant 1 : i32
    %10 = arith.cmpi eq, %arg1, %c1_i32 : i32
    %11 = arith.extui %10 : i1 to i32
    %c0_i32_8 = arith.constant 0 : i32
    %12 = arith.cmpi ne, %11, %c0_i32_8 : i32
    scf.if %12 {
      %c0_9 = arith.constant 0 : index
      %c0_10 = arith.constant 0 : index
      %13 = vector.load %arg11[%c0_9, %c0_10] : memref<8x256xf32, #tpu.memory_space<vmem>>, vector<8x256xf32>
      %c0_11 = arith.constant 0 : index
      %c0_12 = arith.constant 0 : index
      %14 = vector.load %arg5[%c0_11, %c0_12] : memref<1x256xf32, #tpu.memory_space<vmem>>, vector<1x256xf32>
      %15 = vector.broadcast %14 : vector<1x256xf32> to vector<8x256xf32>
      %16 = arith.addf %13, %15 : vector<8x256xf32>
      %cst_13 = arith.constant 0.000000e+00 : f32
      %17 = vector.broadcast %cst_13 : f32 to vector<8x256xf32>
      %18 = arith.maximumf %16, %17 : vector<8x256xf32>
      %19 = arith.truncf %18 : vector<8x256xf32> to vector<8x256xbf16>
      %c0_14 = arith.constant 0 : index
      %c0_15 = arith.constant 0 : index
      %20 = vector.load %arg6[%c0_14, %c0_15] : memref<256x256xbf16, #tpu.memory_space<vmem>>, vector<256x256xbf16>
      %cst_16 = arith.constant dense<0.000000e+00> : vector<8x256xf32>
      %21 = tpu.matmul %19, %20, %cst_16 {dimension_numbers = #tpu.dot_dimension_numbers<[1], [0], [0], [1], [0, 0, 1, 1], [], []>} : vector<8x256xbf16>, vector<256x256xbf16>, vector<8x256xf32> -> vector<8x256xf32>
      %c0_17 = arith.constant 0 : index
      %c0_18 = arith.constant 0 : index
      %22 = vector.load %arg7[%c0_17, %c0_18] : memref<1x256xf32, #tpu.memory_space<vmem>>, vector<1x256xf32>
      %23 = vector.broadcast %22 : vector<1x256xf32> to vector<8x256xf32>
      %24 = arith.addf %21, %23 : vector<8x256xf32>
      %cst_19 = arith.constant 0.000000e+00 : f32
      %25 = vector.broadcast %cst_19 : f32 to vector<8x256xf32>
      %26 = arith.maximumf %24, %25 : vector<8x256xf32>
      %27 = arith.truncf %26 : vector<8x256xf32> to vector<8x256xbf16>
      %c0_20 = arith.constant 0 : index
      %c0_21 = arith.constant 0 : index
      %28 = vector.load %arg8[%c0_20, %c0_21] : memref<256x128xbf16, #tpu.memory_space<vmem>>, vector<256x128xbf16>
      %cst_22 = arith.constant dense<0.000000e+00> : vector<8x128xf32>
      %29 = tpu.matmul %27, %28, %cst_22 {dimension_numbers = #tpu.dot_dimension_numbers<[1], [0], [0], [1], [0, 0, 1, 1], [], []>} : vector<8x256xbf16>, vector<256x128xbf16>, vector<8x128xf32> -> vector<8x128xf32>
      %c0_23 = arith.constant 0 : index
      %c0_24 = arith.constant 0 : index
      %30 = vector.load %arg9[%c0_23, %c0_24] : memref<1x128xf32, #tpu.memory_space<vmem>>, vector<1x128xf32>
      %31 = vector.broadcast %30 : vector<1x128xf32> to vector<8x128xf32>
      %32 = arith.addf %29, %31 : vector<8x128xf32>
      %c0_25 = arith.constant 0 : index
      %c0_26 = arith.constant 0 : index
      %33 = vector.load %arg10[%c0_25, %c0_26] : memref<8x128xf32, #tpu.memory_space<vmem>>, vector<8x128xf32>
      tpu.vector_store %arg10[%c0_25, %c0_26], %32 {strides = array<i32>} : memref<8x128xf32, #tpu.memory_space<vmem>>, vector<8x128xf32>,
    } else {
    }
    return
  }
  func.func @transform_0(%arg0: i32, %arg1: i32) -> i32 {
    %c0_i32 = arith.constant 0 : i32
    %c0_i32_0 = arith.constant 0 : i32
    return %c0_i32 : i32
  }
  func.func @transform_1(%arg0: i32, %arg1: i32) -> (i32, i32) {
    %c0_i32 = arith.constant 0 : i32
    return %arg0, %arg1 : i32, i32
  }
  func.func @transform_2(%arg0: i32, %arg1: i32) -> (i32, i32) {
    %c0_i32 = arith.constant 0 : i32
    %c0_i32_0 = arith.constant 0 : i32
    return %arg1, %c0_i32 : i32, i32
  }
  func.func @transform_3(%arg0: i32, %arg1: i32) -> (i32, i32) {
    %c0_i32 = arith.constant 0 : i32
    %c0_i32_0 = arith.constant 0 : i32
    %c0_i32_1 = arith.constant 0 : i32
    return %c0_i32, %c0_i32_0 : i32, i32
  }
  func.func @transform_4(%arg0: i32, %arg1: i32) -> (i32, i32) {
    %c0_i32 = arith.constant 0 : i32
    %c0_i32_0 = arith.constant 0 : i32
    %c0_i32_1 = arith.constant 0 : i32
    return %c0_i32, %c0_i32_0 : i32, i32
  }
  func.func @transform_5(%arg0: i32, %arg1: i32) -> (i32, i32) {
    %c0_i32 = arith.constant 0 : i32
    %c0_i32_0 = arith.constant 0 : i32
    %c0_i32_1 = arith.constant 0 : i32
    return %c0_i32, %c0_i32_0 : i32, i32
  }
  func.func @transform_6(%arg0: i32, %arg1: i32) -> (i32, i32) {
    %c0_i32 = arith.constant 0 : i32
    %c0_i32_0 = arith.constant 0 : i32
    %c0_i32_1 = arith.constant 0 : i32
    return %c0_i32, %c0_i32_0 : i32, i32
  }
  func.func @transform_7(%arg0: i32, %arg1: i32) -> (i32, i32) {
    %c0_i32 = arith.constant 0 : i32
    %c0_i32_0 = arith.constant 0 : i32
    %c0_i32_1 = arith.constant 0 : i32
    return %c0_i32, %c0_i32_0 : i32, i32
  }
  func.func @transform_8(%arg0: i32, %arg1: i32) -> (i32, i32) {
    %c0_i32 = arith.constant 0 : i32
    %c0_i32_0 = arith.constant 0 : i32
    return %arg0, %c0_i32 : i32, i32
  }
}

</mosaic_0001>

<bundles_post_ra>
// kernel: tpu_custom_call.1
= control target key start
LH: loop header
LB: loop body
LE: loop exit
PB: predicated region body
PF: predicated region fallthrough
CT: control target
= control target key end

     0   :  { %s2491_s0 = inlined_call_operand.<no memory space> [shape: s32[1], index: 0, kind: input, shape index: {}]   ;;  %s2492_s1 = inlined_call_operand.hbm [shape: f32[8,1024], index: 1, kind: input, shape index: {}]   ;;  %s2493_s2 = inlined_call_operand.hbm [shape: bf16[1024,256], index: 2, kind: input, shape index: {}]   ;;  %s2494_s3 = inlined_call_operand.vmem [shape: f32[1,256], index: 3, kind: input, shape index: {}]   ;;  %s2495_s4 = inlined_call_operand.hbm [shape: bf16[256,256], index: 4, kind: input, shape index: {}]   ;;  %s2496_s5 = inlined_call_operand.vmem [shape: f32[1,256], index: 5, kind: input, shape index: {}]   ;;  %s2497_s6 = inlined_call_operand.hbm [shape: bf16[256,128], index: 6, kind: input, shape index: {}]   ;;  %s2498_s7 = inlined_call_operand.vmem [shape: f32[1,128], index: 7, kind: input, shape index: {}]   ;;  %s2499_s8 = inlined_call_operand.hbm [shape: f32[8,128], index: 8, kind: output, shape index: {}]  }
   0x1   :  { %2505 = sst [smem:[#allocation18_spill]] %s2492_s1 }
   0x2   :  { %2506 = sst [smem:[#allocation19_spill]] %s2495_s4 }
   0x3   :  { %14 = vsyncpa [#allocation5], 0 }
   0x4   :  { %16 = vsyncpa [#allocation5 + $0x1], 0 }
   0x5   :  { %17 = vsyncpa [#allocation8], 0 }
   0x6   :  { %19 = vsyncpa [#allocation8 + $0x1], 0 }
   0x7   :  { %20 = vsyncpa [#allocation11], 0 }
   0x8   :  { %21 = vsyncpa [#allocation6], 0  ;;  %s2134_s26 = smov 0   ;;  %s2136_s27 = smov 0  }
   0x9   :  { %s2138_s28 = smov 0   ;;  %s2140_s29 = smov 0  }
   0xa   :  { %s2142_s30 = smov 0   ;;  %s2144_s9 = smov 0  }
   0xb LB: > { %s2163_s10 = sadd.s32 4294967295, %s2077_s9   ;;  %p82_p0 = scmp.ne.s32.totalorder %s2061_s27, %s2057_s26  ;;  %s2077_s9 = sphi %s2144_s9, %s27_s9   ;;  %s2073_s30 = sphi %s2142_s30, %s2526_s30   ;;  %s2069_s29 = sphi %s2140_s29, %s2525_s29   ;;  %s2065_s28 = sphi %s2138_s28, %s2524_s28   ;;  %s2061_s27 = sphi %s2136_s27, %s2523_s27   ;;  %s2057_s26 = sphi %s2134_s26, %s2522_s26  }
   0xc   : > { %p2500_p1 = scmp.eq.s32.totalorder %s2163_s10, 0  ;;  %p1456_p2 = scmp.ge.s32.totalorder %s2077_s9, 1 }
   0xd   : > { %p250_p3 = scmp.lt.s32.totalorder %s2077_s9, 3  ;;  %s2079_s13 = smov [#allocation9]  }
   0xe   : > { %p2171_p4 = por %p2500_p1, %p82_p0  ;;  %s268_s14 = sshll.u32 %s2079_s13, 4  ;;  %s269_s14 = int_to_ptr.vmem [resolvable:$true] %s268_s14 }
   0xf   : > { %p2175_p5 = pnand %p1456_p2, %p250_p3  ;;  %s2080_s16 = smov [#allocation10]  }
  0x10   : > { %s2507_s11 = scalar_select %p2171_p4, 1, 0 }
  0x11   : > { %s2508_s12 = scalar_select %p2175_p5, 1, 0 }
  0x12   : > { %p1632_p6 = pneg %p2175_p5  ;;  %s284_s17 = sshll.u32 %s2080_s16, 4  ;;  %s2187_s17 = int_to_ptr.vmem [resolvable:$true] %s284_s17 }
  0x13   : > { %s2510_s4 = sld [smem:[#allocation19_spill]] }
  0x14   : > { %p2183_p7 = pnand %p1632_p6, %p2500_p1 }
  0x16   : > { %p1871_p9 = pneg %p2183_p7 }
  0x19   : > { %s1869_s20 = scalar_lea.hbm %s2510_s4, 4096 }
  0x1a   : > { %p1870_p8 = scmp.ne.s32.totalorder %s2510_s4, %s1869_s20  ;;  %p1876_p12 = scmp.lt.u32.totalorder %s1869_s20, %s2510_s4 }
  0x1c   : > { %p1872_p10 = pnand %p1871_p9, %p1870_p8 }
  0x1e   : > { %p1873_p11 = pneg %p1872_p10 }
  0x20   : > { %p1878_p13 = pnand %p1876_p12, %p1873_p11 }
  0x22   : > { %1881 = shalt.err (!%p1878_p13)
}
  0x23   : > { %s1882_s24 = scalar_lea.vmem %s269_s14, 4096  ;;  %p1890_p6 = scmp.lt.s32.totalorder %s269_s14, %s269_s14 }
  0x24   : > { %p1883_p0 = scmp.ne.s32.totalorder %s269_s14, %s1882_s24  ;;  %p1891_p1 = scmp.lt.s32.totalorder %s1882_s24, %s1882_s24 }
  0x26   : > { %p1885_p2 = pnand %p1883_p0, %p1871_p9  ;;  %p1892_p4 = por %p1891_p1, %p1890_p6 }
  0x28   : > { %p1886_p3 = pneg %p1885_p2 }
  0x2a   : > { %p1893_p5 = pnand %p1892_p4, %p1886_p3 }
  0x2c   : > { %1896 = shalt.err (!%p1893_p5)
}
  0x2d   : > { %s2503_s25 = smov 128   ;;  %s2504_s26 = smov 8  }
  0x2e   : > { %1635 = dma.hbm_to_vmem [thread:$0]  (!%p2183_p7), %s2510_s4, 4096, %s269_s14, [#allocation8], %s2503_s25, %s2503_s25, %s2504_s26  }
  0x2f   : > { %s1897_s20 = scalar_lea.hbm %s2497_s6, 2048 }
  0x30   : > { %p1898_p1 = scmp.ne.s32.totalorder %s2497_s6, %s1897_s20  ;;  %p1904_p8 = scmp.lt.u32.totalorder %s1897_s20, %s2497_s6 }
  0x32   : > { %p1900_p4 = pnand %p1898_p1, %p1871_p9 }
  0x34   : > { %p1901_p5 = pneg %p1900_p4 }
  0x36   : > { %p1906_p10 = pnand %p1904_p8, %p1901_p5 }
  0x38   : > { %1909 = shalt.err (!%p1906_p10)
}
  0x39   : > { %s1910_s14 = scalar_lea.vmem %s2187_s17, 2048  ;;  %p1918_p0 = scmp.lt.s32.totalorder %s2187_s17, %s2187_s17 }
  0x3a   : > { %p1911_p11 = scmp.ne.s32.totalorder %s2187_s17, %s1910_s14  ;;  %p1919_p2 = scmp.lt.s32.totalorder %s1910_s14, %s1910_s14 }
  0x3c   : > { %p1913_p12 = pnand %p1911_p11, %p1871_p9  ;;  %p1920_p3 = por %p1919_p2, %p1918_p0 }
  0x3e   : > { %p1914_p13 = pneg %p1913_p12 }
  0x40   : > { %p1921_p6 = pnand %p1920_p3, %p1914_p13 }
  0x42   : > { %1924 = shalt.err (!%p1921_p6)
}
  0x43   : > { %s2083_s24 = smov 64   ;;  %s2084_s13 = smov 4  }
  0x44   : > { %1638 = dma.hbm_to_vmem [thread:$0]  (!%p2183_p7), %s2497_s6, 2048, %s2187_s17, [#allocation11], %s2083_s24, %s2083_s24, %s2084_s13  }
  0x45   : > { %s36_s19 = sadd.s32 1, %s2073_s30  ;;  %s69_s20 = sadd.s32 1, %s2065_s28 }
  0x46   : > { %p37_p9 = scmp.ge.s32.totalorder %s36_s19, 2  ;;  %p76_p1 = scmp.ne.s32.totalorder %s2065_s28, %s2061_s27 }
  0x47   : > { %p77_p4 = scmp.eq.s32.totalorder %s2077_s9, 0  ;;  %p1648_p5 = scmp.lt.s32.totalorder %s2077_s9, 2 }
  0x48   : > { %s2528_s19 = smov (%p37_p9, %s36_s19), 0  ;;  %s2248_s21 = sand.u32 1, %s2065_s28  }
  0x49   : > { %p78_p8 = por %p77_p4, %p76_p1  ;;  %s65_s15 = ssub.s32 %s2073_s30, %s2528_s19 }
  0x4a   : > { %p67_p10 = scmp.eq.s32.totalorder %s65_s15, 0  ;;  %s1460_s17 = sshll.u32 %s2248_s21, 5 }
  0x4b   : > { %s1591_s22 = sshll.u32 %s2073_s30, 9  ;;  %s2511_s1 = sld [smem:[#allocation18_spill]] }
  0x4c   : > { %s2255_s23 = scalar_select %p67_p10, %s2065_s28, %s69_s20  }
  0x4d   : > { %s305_s13 = scalar_lea.vmem [#allocation4], %s1460_s17  ;;  %p2266_p7 = pnand %p1648_p5, %p78_p8 }
  0x4e   : > { %s315_s16 = sshll.u32 %s305_s13, 4  ;;  %s1463_s20 = sshll.u32 %s2248_s21, 9  ;;  %s2262_s16 = int_to_ptr.vmem [resolvable:$true] %s315_s16 }
  0x4f   : > { %s302_s0 = scalar_lea.sflag [#allocation5], %s2248_s21  ;;  %p1927_p12 = pneg %p2266_p7 }
  0x51   : > { %s2260_s24 = scalar_lea.hbm %s2511_s1, %s1591_s22  ;;  %s1930_s13 = scalar_lea.hbm %s2511_s1, 1024 }
  0x52   : > { %s1925_s22 = scalar_lea.hbm %s2260_s24, 512  ;;  %p1931_p2 = scmp.lt.u32.totalorder %s2260_s24, %s2511_s1 }
  0x53   : > { %p1926_p11 = scmp.ne.s32.totalorder %s2260_s24, %s1925_s22  ;;  %p1932_p3 = scmp.lt.u32.totalorder %s1930_s13, %s1925_s22 }
  0x54   : > { %p1934_p9 = scmp.lt.u32.totalorder %s1925_s22, %s2260_s24 }
  0x55   : > { %p1928_p13 = pnand %p1927_p12, %p1926_p11  ;;  %p1933_p6 = por %p1932_p3, %p1931_p2 }
  0x57   : > { %p1929_p0 = pneg %p1928_p13  ;;  %p1935_p1 = por %p1934_p9, %p1933_p6 }
  0x59   : > { %p1936_p4 = pnand %p1935_p1, %p1929_p0 }
  0x5b   : > { %1939 = shalt.err (!%p1936_p4)
}
  0x5c   : > { %s1940_s15 = scalar_lea.vmem %s2262_s16, 512  ;;  %s2085_s17 = smov [#allocation4]  }
  0x5d   : > { %p1941_p5 = scmp.ne.s32.totalorder %s2262_s16, %s1940_s15  ;;  %s1945_s14 = sshll.u32 %s2085_s17, 4  ;;  %s1946_s14 = int_to_ptr.vmem [resolvable:$false] %s1945_s14 }
  0x5e   : > { %s1947_s25 = scalar_lea.vmem %s1946_s14, 1024  ;;  %p1948_p11 = scmp.lt.s32.totalorder %s2262_s16, %s1946_s14 }
  0x5f   : > { %p1943_p8 = pnand %p1941_p5, %p1927_p12  ;;  %p1949_p13 = scmp.lt.s32.totalorder %s1947_s25, %s1940_s15 }
  0x61   : > { %p1944_p10 = pneg %p1943_p8  ;;  %p1950_p2 = por %p1949_p13, %p1948_p11 }
  0x63   : > { %p1951_p3 = pnand %p1950_p2, %p1944_p10 }
  0x65   : > { %1954 = shalt.err (!%p1951_p3)
}
  0x66   : > { %1642 = dma.hbm_to_vmem [thread:$0]  (!%p2266_p7), %s2260_s24, 512, %s2262_s16, %s302_s0  }
  0x67   : > { %s326_s26 = scalar_lea.vmem [#allocation7], %s1463_s20  ;;  %s322_s13 = sand.u32 1, %s2077_s9  }
  0x68   : > { %s334_s22 = sshll.u32 %s326_s26, 4  ;;  %s2513_s17 = sshll.u32 %s2073_s30, 13  ;;  %s2301_s22 = int_to_ptr.vmem [resolvable:$true] %s334_s22 }
  0x69   : > { %s2308_s25 = scalar_lea.hbm %s2493_s2, %s2513_s17  ;;  %s2310_s1 = scalar_lea.sflag [#allocation8], %s322_s13 }
  0x6a   : > { %s1955_s4 = scalar_lea.hbm %s2308_s25, 8192  ;;  %s1960_s16 = scalar_lea.hbm %s2493_s2, 16384 }
  0x6b   : > { %p1956_p0 = scmp.ne.s32.totalorder %s2308_s25, %s1955_s4  ;;  %p1961_p1 = scmp.lt.u32.totalorder %s2308_s25, %s2493_s2 }
  0x6c   : > { %p1962_p4 = scmp.lt.u32.totalorder %s1960_s16, %s1955_s4  ;;  %p1964_p8 = scmp.lt.u32.totalorder %s1955_s4, %s2308_s25 }
  0x6d   : > { %p1958_p6 = pnand %p1956_p0, %p1927_p12 }
  0x6e   : > { %p1963_p5 = por %p1962_p4, %p1961_p1 }
  0x6f   : > { %p1959_p9 = pneg %p1958_p6 }
  0x70   : > { %p1965_p10 = por %p1964_p8, %p1963_p5 }
  0x72   : > { %p1966_p11 = pnand %p1965_p10, %p1959_p9 }
  0x74   : > { %1969 = shalt.err (!%p1966_p11)
}
  0x75   : > { %s1970_s26 = scalar_lea.vmem %s2301_s22, 8192  ;;  %s2086_s13 = smov [#allocation7]  }
  0x76   : > { %p1971_p13 = scmp.ne.s32.totalorder %s2301_s22, %s1970_s26  ;;  %s1975_s17 = sshll.u32 %s2086_s13, 4  ;;  %s1976_s17 = int_to_ptr.vmem [resolvable:$false] %s1975_s17 }
  0x77   : > { %s1977_s15 = scalar_lea.vmem %s1976_s17, 16384  ;;  %p1978_p0 = scmp.lt.s32.totalorder %s2301_s22, %s1976_s17 }
  0x78   : > { %p1973_p2 = pnand %p1971_p13, %p1927_p12  ;;  %p1979_p6 = scmp.lt.s32.totalorder %s1977_s15, %s1970_s26 }
  0x7a   : > { %p1974_p3 = pneg %p1973_p2  ;;  %p1980_p1 = por %p1979_p6, %p1978_p0 }
  0x7c   : > { %p1981_p4 = pnand %p1980_p1, %p1974_p3 }
  0x7e   : > { %1984 = shalt.err (!%p1981_p4)
}
  0x7f   : > { %s2514_s4 = smov 8   ;;  %s2515_s14 = smov 128  }
  0x80   : > { %1645 = dma.hbm_to_vmem [thread:$0]  (!%p2266_p7), %s2308_s25, 8192, %s2301_s22, %s2310_s1, %s2515_s14, %s2515_s14, %s2514_s4  }
  0x81   : > { %p2516_p12 = scmp.ne.s32.totalorder %s2508_s12, 0 }
  0x82   : > { %s348_s21 = sand.u32 (!%p2516_p12), 1, %s2061_s27   ;;  %p2517_p9 = scmp.ne.s32.totalorder (!%p2516_p12), %s2507_s11, 0 }
  0x83   : > { %346 = sbr.rel (%p2516_p12) target bundleno = 919 (0x397), region = 52  ;;  %s1468_s24 = sshll.u32 (!%p2516_p12), %s348_s21, 5 }
  0x84   : > { %s349_s16 = scalar_lea.sflag (!%p2516_p12), [#allocation5], %s348_s21  ;;  %s2342_s20 = scalar_lea.vmem (!%p2516_p12), [#allocation4], %s1468_s24 }
  0x8a   : > { %2036 = dma.done.wait (%p2517_p9), %s349_s16, 512  }
  0x8b   : > { %2038 = vsyncadd (%p2517_p9), %s349_s16, 4294966784  ;;  %s357_s18 = sand.u32 1, %s2163_s10   ;;  %s1469_s0 = sshll.u32 %s348_s21, 9 }
  0x8c   : > { %s358_s1 = scalar_lea.sflag [#allocation8], %s357_s18  ;;  %s2349_s22 = scalar_lea.vmem [#allocation7], %s1469_s0 }
  0x8d   : > { %2040 = dma.done.wait (%p2517_p9), %s358_s1, 8192  }
  0x8e   : > { %2042 = vsyncadd (%p2517_p9), %s358_s1, 4294959104  ;;  %p2518_p7 = scmp.eq.s32.totalorder %s2163_s10, 0 }
  0x90   : > { %2044 = dma.done.wait (%p2518_p7), [#allocation8], 4096   ;;  %p2519_p5 = pmov %p2518_p7 }
  0x92   : > { %2046 = vsyncadd (%p2519_p5), [#allocation8], 4294963200  ;;  %p2520_p8 = pmov %p2519_p5 }
  0x93   : > { %p2521_p10 = pmov %p2519_p5 }
  0x94   : > { %2048 = dma.done.wait (%p2520_p8), [#allocation11], 2048  }
  0x95   : > { %2050 = vsyncadd (%p2521_p10), [#allocation11], 4294965248  ;;  %p1472_p11 = scmp.ne.s32.totalorder %s2069_s29, 0 }
  0x96   : > { %v2087_v0 = vmov (!%p1472_p11), 0.0  }
  0x97   : > { %408 = sbr.rel (%p1472_p11) target bundleno = 158 (0x9e), region = 72  ;;  %409 = vst [vmem:[#allocation2] sm:$0xff] (!%p1472_p11), %v2087_v0  ;;  %410 = vst [vmem:[#allocation2 + $0x8] sm:$0xff] (!%p1472_p11), %v2087_v0 }
  0x9e PF: > { %v1709_v1 = vld [vmem:[%s2349_s22 + $0x4] ss:$8 sps:$4 sm:$0xff]   ;;  %v1713_v3 = vld [vmem:[%s2349_s22] ss:$8 sps:$4 sm:$0xff]   ;;  %v1715_v5 = vld [vmem:[%s2349_s22 + $0x14] ss:$8 sps:$4 sm:$0xff]  }
  0x9f   : > { %v1711_v2 = vld [vmem:[%s2349_s22 + $0x104] ss:$8 sps:$4 sm:$0xff]   ;;  %805 = vmatprep.subr.bf16.mxu0 %v1709_v1  ;;  %v1714_v4 = vld [vmem:[%s2349_s22 + $0x100] ss:$8 sps:$4 sm:$0xff]   ;;  %v1717_v6 = vld [vmem:[%s2349_s22 + $0x114] ss:$8 sps:$4 sm:$0xff]  }
  0xa0   : > { %846 = vmatprep.subr.bf16.mxu1 %v1711_v2  ;;  %806 = vmatpush1.bf16.msra.mxu0 %v1713_v3  ;;  %v1719_v7 = vld [vmem:[%s2349_s22 + $0x10] ss:$8 sps:$4 sm:$0xff]   ;;  %v1721_v9 = vld [vmem:[%s2349_s22 + $0x24] ss:$8 sps:$4 sm:$0xff]   ;;  %v1725_v11 = vld [vmem:[%s2349_s22 + $0x20] ss:$8 sps:$4 sm:$0xff]  }
  0xa1   : > { %847 = vmatpush1.bf16.msra.mxu1 %v1714_v4  ;;  %807 = vmatprep.subr.bf16.mxu0 %v1715_v5  ;;  %v1720_v8 = vld [vmem:[%s2349_s22 + $0x110] ss:$8 sps:$4 sm:$0xff]   ;;  %v1723_v10 = vld [vmem:[%s2349_s22 + $0x124] ss:$8 sps:$4 sm:$0xff]   ;;  %v1726_v12 = vld [vmem:[%s2349_s22 + $0x120] ss:$8 sps:$4 sm:$0xff]  }
  0xa2   : > { %848 = vmatprep.subr.bf16.mxu1 %v1717_v6  ;;  %v1727_v13 = vld [vmem:[%s2349_s22 + $0x34] ss:$8 sps:$4 sm:$0xff]   ;;  %v1731_v15 = vld [vmem:[%s2349_s22 + $0x30] ss:$8 sps:$4 sm:$0xff]   ;;  %v1733_v17 = vld [vmem:[%s2349_s22 + $0x44] ss:$8 sps:$4 sm:$0xff]  }
  0xa3   : > { %v1729_v14 = vld [vmem:[%s2349_s22 + $0x134] ss:$8 sps:$4 sm:$0xff]   ;;  %v1732_v16 = vld [vmem:[%s2349_s22 + $0x130] ss:$8 sps:$4 sm:$0xff]   ;;  %v1735_v18 = vld [vmem:[%s2349_s22 + $0x144] ss:$8 sps:$4 sm:$0xff]  }
  0xa4   : > { %808 = vmatpush1.bf16.msra.mxu0 %v1719_v7  ;;  %v1737_v19 = vld [vmem:[%s2349_s22 + $0x40] ss:$8 sps:$4 sm:$0xff]   ;;  %v1739_v21 = vld [vmem:[%s2349_s22 + $0x54] ss:$8 sps:$4 sm:$0xff]   ;;  %v1743_v23 = vld [vmem:[%s2349_s22 + $0x50] ss:$8 sps:$4 sm:$0xff]  }
  0xa5   : > { %849 = vmatpush1.bf16.msra.mxu1 %v1720_v8  ;;  %809 = vmatprep.subr.bf16.mxu0 %v1721_v9  ;;  %v1738_v20 = vld [vmem:[%s2349_s22 + $0x140] ss:$8 sps:$4 sm:$0xff]   ;;  %v1741_v22 = vld [vmem:[%s2349_s22 + $0x154] ss:$8 sps:$4 sm:$0xff]   ;;  %v1744_v24 = vld [vmem:[%s2349_s22 + $0x150] ss:$8 sps:$4 sm:$0xff]  }
  0xa6   : > { %850 = vmatprep.subr.bf16.mxu1 %v1723_v10  ;;  %v1745_v25 = vld [vmem:[%s2349_s22 + $0x64] ss:$8 sps:$4 sm:$0xff]   ;;  %v1749_v27 = vld [vmem:[%s2349_s22 + $0x60] ss:$8 sps:$4 sm:$0xff]   ;;  %v1751_v29 = vld [vmem:[%s2349_s22 + $0x74] ss:$8 sps:$4 sm:$0xff]  }
  0xa7   : > { %v1747_v26 = vld [vmem:[%s2349_s22 + $0x164] ss:$8 sps:$4 sm:$0xff]   ;;  %v1750_v28 = vld [vmem:[%s2349_s22 + $0x160] ss:$8 sps:$4 sm:$0xff]   ;;  %v1753_v30 = vld [vmem:[%s2349_s22 + $0x174] ss:$8 sps:$4 sm:$0xff]  }
  0xa8   : > { %810 = vmatpush1.bf16.msra.mxu0 %v1725_v11  ;;  %v1755_v31 = vld [vmem:[%s2349_s22 + $0x70] ss:$8 sps:$4 sm:$0xff]   ;;  %v1757_v33 = vld [vmem:[%s2349_s22 + $0x84] ss:$8 sps:$4 sm:$0xff]   ;;  %v1761_v35 = vld [vmem:[%s2349_s22 + $0x80] ss:$8 sps:$4 sm:$0xff]  }
  0xa9   : > { %851 = vmatpush1.bf16.msra.mxu1 %v1726_v12  ;;  %811 = vmatprep.subr.bf16.mxu0 %v1727_v13  ;;  %v1756_v32 = vld [vmem:[%s2349_s22 + $0x170] ss:$8 sps:$4 sm:$0xff]   ;;  %v1759_v34 = vld [vmem:[%s2349_s22 + $0x184] ss:$8 sps:$4 sm:$0xff]   ;;  %v1762_v36 = vld [vmem:[%s2349_s22 + $0x180] ss:$8 sps:$4 sm:$0xff]  }
  0xaa   : > { %852 = vmatprep.subr.bf16.mxu1 %v1729_v14  ;;  %v1763_v37 = vld [vmem:[%s2349_s22 + $0x94] ss:$8 sps:$4 sm:$0xff]   ;;  %v1767_v39 = vld [vmem:[%s2349_s22 + $0x90] ss:$8 sps:$4 sm:$0xff]   ;;  %v1769_v41 = vld [vmem:[%s2349_s22 + $0xa4] ss:$8 sps:$4 sm:$0xff]  }
  0xab   : > { %v1765_v38 = vld [vmem:[%s2349_s22 + $0x194] ss:$8 sps:$4 sm:$0xff]   ;;  %v1768_v40 = vld [vmem:[%s2349_s22 + $0x190] ss:$8 sps:$4 sm:$0xff]   ;;  %v1771_v42 = vld [vmem:[%s2349_s22 + $0x1a4] ss:$8 sps:$4 sm:$0xff]  }
  0xac   : > { %812 = vmatpush1.bf16.msra.mxu0 %v1731_v15  ;;  %v1773_v43 = vld [vmem:[%s2349_s22 + $0xa0] ss:$8 sps:$4 sm:$0xff]   ;;  %v1775_v45 = vld [vmem:[%s2349_s22 + $0xb4] ss:$8 sps:$4 sm:$0xff]   ;;  %v1779_v50 = vld [vmem:[%s2349_s22 + $0xb0] ss:$8 sps:$4 sm:$0xff]  }
  0xad   : > { %853 = vmatpush1.bf16.msra.mxu1 %v1732_v16  ;;  %813 = vmatprep.subr.bf16.mxu0 %v1733_v17  ;;  %v1774_v44 = vld [vmem:[%s2349_s22 + $0x1a0] ss:$8 sps:$4 sm:$0xff]   ;;  %v1777_v46 = vld [vmem:[%s2349_s22 + $0x1b4] ss:$8 sps:$4 sm:$0xff]   ;;  %v1780_v51 = vld [vmem:[%s2349_s22 + $0x1b0] ss:$8 sps:$4 sm:$0xff]  }
  0xae   : > { %854 = vmatprep.subr.bf16.mxu1 %v1735_v18  ;;  %v412_v47 = vld [vmem:[%s2342_s20 + $0x8] sm:$0xff]  ;;  %v414_v49 = vld [vmem:[%s2342_s20 + $0x18] sm:$0xff]  ;;  %v411_v5 = vld [vmem:[%s2342_s20] sm:$0xff]  ;;  %p1537_p13 = scmp.ne.s32.totalorder %s2069_s29, 1 }
  0xaf   : > { %v418_v48 = vpack.c.bf16 %v412_v47, %v412_v47  ;;  %v420_v52 = vpack.c.bf16 %v414_v49, %v414_v49  ;;  %v1781_v53 = vld [vmem:[%s2349_s22 + $0xc4] ss:$8 sps:$4 sm:$0xff]   ;;  %v1785_v55 = vld [vmem:[%s2349_s22 + $0xc0] ss:$8 sps:$4 sm:$0xff]   ;;  %v1787_v57 = vld [vmem:[%s2349_s22 + $0xd4] ss:$8 sps:$4 sm:$0xff]   ;;  %v417_v7 = vpack.c.bf16 %v411_v5, %v411_v5 }
  0xb0   : > { %814 = vmatpush1.bf16.msra.mxu0 %v1737_v19  ;;  %v1783_v54 = vld [vmem:[%s2349_s22 + $0x1c4] ss:$8 sps:$4 sm:$0xff]   ;;  %v1786_v56 = vld [vmem:[%s2349_s22 + $0x1c0] ss:$8 sps:$4 sm:$0xff]   ;;  %v1789_v58 = vld [vmem:[%s2349_s22 + $0x1d4] ss:$8 sps:$4 sm:$0xff]  }
  0xb1   : > { %855 = vmatpush1.bf16.msra.mxu1 %v1738_v20  ;;  %815 = vmatprep.subr.bf16.mxu0 %v1739_v21  ;;  %v1791_v59 = vld [vmem:[%s2349_s22 + $0xd0] ss:$8 sps:$4 sm:$0xff]   ;;  %v1793_v61 = vld [vmem:[%s2349_s22 + $0xe4] ss:$8 sps:$4 sm:$0xff]   ;;  %v1797_v63 = vld [vmem:[%s2349_s22 + $0xe0] ss:$8 sps:$4 sm:$0xff]  }
  0xb2   : > { %856 = vmatprep.subr.bf16.mxu1 %v1741_v22  ;;  %837 = vmatprep.mubr.bf16.mxu0 %v418_v48  ;;  %v1792_v60 = vld [vmem:[%s2349_s22 + $0x1d0] ss:$8 sps:$4 sm:$0xff]   ;;  %v1795_v62 = vld [vmem:[%s2349_s22 + $0x1e4] ss:$8 sps:$4 sm:$0xff]   ;;  %v1798_v0 = vld [vmem:[%s2349_s22 + $0x1e0] ss:$8 sps:$4 sm:$0xff]  }
  0xb3   : > { %878 = vmatprep.mubr.bf16.mxu1 %v420_v52  ;;  %v1799_v1 = vld [vmem:[%s2349_s22 + $0xf4] ss:$8 sps:$4 sm:$0xff]   ;;  %v1803_v3 = vld [vmem:[%s2349_s22 + $0xf0] ss:$8 sps:$4 sm:$0xff]   ;;  %v1855_v48 = vld [vmem:[#allocation10 + $0x48] sm:$0xff] (!%p1537_p13)  }
  0xb4   : > { %816 = vmatpush1.bf16.msra.mxu0 %v1743_v23  ;;  %v1801_v2 = vld [vmem:[%s2349_s22 + $0x1f4] ss:$8 sps:$4 sm:$0xff]   ;;  %v1804_v4 = vld [vmem:[%s2349_s22 + $0x1f0] ss:$8 sps:$4 sm:$0xff]   ;;  %v1805_v23 = vld [vmem:[#allocation9 + $0x4] ss:$8 sps:$4 sm:$0xff] (!%p1537_p13)  }
  0xb5   : > { %857 = vmatpush1.bf16.msra.mxu1 %v1744_v24  ;;  %817 = vmatprep.subr.bf16.mxu0 %v1745_v25  ;;  %v413_v6 = vld [vmem:[%s2342_s20 + $0x10] sm:$0xff]  ;;  %v416_v14 = vld [vmem:[#allocation2 + $0x8] sm:$0xff]  ;;  %v1807_v24 = vld [vmem:[#allocation9] ss:$8 sps:$4 sm:$0xff] (!%p1537_p13)  }
  0xb6   : > { %858 = vmatprep.subr.bf16.mxu1 %v1747_v26  ;;  %v419_v8 = vpack.c.bf16 %v413_v6, %v413_v6  ;;  %v415_v10 = vld [vmem:[#allocation2] sm:$0xff]  ;;  %v1829_v52 = vld [vmem:[#allocation9 + $0x84] ss:$8 sps:$4 sm:$0xff] (!%p1537_p13)   ;;  %v1843_v6 = vld [vmem:[#allocation9 + $0xc0] ss:$8 sps:$4 sm:$0xff] (!%p1537_p13)  }
  0xb7   : > { %v1808_v25 = vld [vmem:[#allocation9 + $0x14] ss:$8 sps:$4 sm:$0xff] (!%p1537_p13)   ;;  %v1810_v26 = vld [vmem:[#allocation9 + $0x10] ss:$8 sps:$4 sm:$0xff] (!%p1537_p13)  }
  0xb8   : > { %818 = vmatpush1.bf16.msra.mxu0 %v1749_v27  ;;  %v1811_v27 = vld [vmem:[#allocation9 + $0x24] ss:$8 sps:$4 sm:$0xff] (!%p1537_p13)   ;;  %v1828_v47 = vld [vmem:[#allocation9 + $0x70] ss:$8 sps:$4 sm:$0xff] (!%p1537_p13)  }
  0xb9   : > { %859 = vmatpush1.bf16.msra.mxu1 %v1750_v28  ;;  %819 = vmatprep.subr.bf16.mxu0 %v1751_v29  ;;  %v1813_v28 = vld [vmem:[#allocation9 + $0x20] ss:$8 sps:$4 sm:$0xff] (!%p1537_p13)   ;;  %v1814_v29 = vld [vmem:[#allocation9 + $0x34] ss:$8 sps:$4 sm:$0xff] (!%p1537_p13)  }
  0xba   : > { %860 = vmatprep.subr.bf16.mxu1 %v1753_v30  ;;  %v899_v30 = vlaneseq (!%p1537_p13) }
  0xbc   : > { %820 = vmatpush1.bf16.msra.mxu0 %v1755_v31  ;;  %v1816_v31 = vld [vmem:[#allocation9 + $0x30] ss:$8 sps:$4 sm:$0xff] (!%p1537_p13)  }
  0xbd   : > { %861 = vmatpush1.bf16.msra.mxu1 %v1756_v32  ;;  %821 = vmatprep.subr.bf16.mxu0 %v1757_v33  ;;  %v1817_v32 = vld [vmem:[#allocation9 + $0x44] ss:$8 sps:$4 sm:$0xff] (!%p1537_p13)   ;;  %v2433_v33 = vshrl.u32 (!%p1537_p13), %v899_v30, 7 }
  0xbe   : > { %862 = vmatprep.subr.bf16.mxu1 %v1759_v34  ;;  %v1819_v34 = vld [vmem:[#allocation9 + $0x40] ss:$8 sps:$4 sm:$0xff] (!%p1537_p13)  }
  0xbf   : > { %v901_v5 = vsub.s32 (!%p1537_p13), 0, %v2433_v33 }
  0xc0   : > { %822 = vmatpush1.bf16.msra.mxu0 %v1761_v35  ;;  %v1820_v35 = vld [vmem:[#allocation9 + $0x54] ss:$8 sps:$4 sm:$0xff] (!%p1537_p13)  }
  0xc1   : > { %863 = vmatpush1.bf16.msra.mxu1 %v1762_v36  ;;  %823 = vmatprep.subr.bf16.mxu0 %v1763_v37  ;;  %v905_v36 = vsub.s32 (!%p1537_p13), 1, %v2433_v33  ;;  %v1822_v37 = vld [vmem:[#allocation9 + $0x50] ss:$8 sps:$4 sm:$0xff] (!%p1537_p13)  }
  0xc2   : > { %864 = vmatprep.subr.bf16.mxu1 %v1765_v38  ;;  %v1823_v38 = vld [vmem:[#allocation9 + $0x64] ss:$8 sps:$4 sm:$0xff] (!%p1537_p13)  }
  0xc4   : > { %824 = vmatpush1.bf16.msra.mxu0 %v1767_v39  ;;  %v1825_v39 = vld [vmem:[#allocation9 + $0x60] ss:$8 sps:$4 sm:$0xff] (!%p1537_p13)  }
  0xc5   : > { %865 = vmatpush1.bf16.msra.mxu1 %v1768_v40  ;;  %825 = vmatprep.subr.bf16.mxu0 %v1769_v41  ;;  %v897_v41 = vld [vmem:[%s2494_s3] sm:$0x3] (!%p1537_p13) }
  0xc6   : > { %866 = vmatprep.subr.bf16.mxu1 %v1771_v42  ;;  %v1826_v42 = vld [vmem:[#allocation9 + $0x74] ss:$8 sps:$4 sm:$0xff] (!%p1537_p13)  }
  0xc8   : > { %826 = vmatpush1.bf16.msra.mxu0 %v1773_v43  ;;  %v906_v43 = vrot.slane (!%p1537_p13), %v897_v41, %v905_v36 }
  0xc9   : > { %867 = vmatpush1.bf16.msra.mxu1 %v1774_v44  ;;  %827 = vmatprep.subr.bf16.mxu0 %v1775_v45  ;;  %v1853_v44 = vld [vmem:[#allocation10 + $0x40] sm:$0xff] (!%p1537_p13)  }
  0xca   : > { %868 = vmatprep.subr.bf16.mxu1 %v1777_v46  ;;  %v1854_v46 = vld [vmem:[#allocation10] sm:$0xff] (!%p1537_p13)  }
  0xcc   : > { %828 = vmatpush1.bf16.msra.mxu0 %v1779_v50  ;;  %v1856_v50 = vld [vmem:[#allocation10 + $0x8] sm:$0xff] (!%p1537_p13)  }
  0xcd   : > { %869 = vmatpush1.bf16.msra.mxu1 %v1780_v51  ;;  %829 = vmatprep.subr.bf16.mxu0 %v1781_v53  ;;  %v1857_v51 = vld [vmem:[#allocation10 + $0x50] sm:$0xff] (!%p1537_p13)  }
  0xce   : > { %870 = vmatprep.subr.bf16.mxu1 %v1783_v54  ;;  %v1831_v54 = vld [vmem:[#allocation9 + $0x80] ss:$8 sps:$4 sm:$0xff] (!%p1537_p13)  }
  0xd0   : > { %830 = vmatpush1.bf16.msra.mxu0 %v1785_v55  ;;  %v1858_v55 = vld [vmem:[#allocation10 + $0x10] sm:$0xff] (!%p1537_p13)  }
  0xd1   : > { %871 = vmatpush1.bf16.msra.mxu1 %v1786_v56  ;;  %831 = vmatprep.subr.bf16.mxu0 %v1787_v57  ;;  %v1859_v56 = vld [vmem:[#allocation10 + $0x58] sm:$0xff] (!%p1537_p13)  }
  0xd2   : > { %872 = vmatprep.subr.bf16.mxu1 %v1789_v58  ;;  %v1832_v57 = vld [vmem:[#allocation9 + $0x94] ss:$8 sps:$4 sm:$0xff] (!%p1537_p13)   ;;  %v1834_v58 = vld [vmem:[#allocation9 + $0x90] ss:$8 sps:$4 sm:$0xff] (!%p1537_p13)  }
  0xd4   : > { %832 = vmatpush1.bf16.msra.mxu0 %v1791_v59  ;;  %v1835_v59 = vld [vmem:[#allocation9 + $0xa4] ss:$8 sps:$4 sm:$0xff] (!%p1537_p13)  }
  0xd5   : > { %873 = vmatpush1.bf16.msra.mxu1 %v1792_v60  ;;  %833 = vmatprep.subr.bf16.mxu0 %v1793_v61  ;;  %v1860_v60 = vld [vmem:[#allocation10 + $0x18] sm:$0xff] (!%p1537_p13)   ;;  %v1861_v61 = vld [vmem:[#allocation10 + $0x60] sm:$0xff] (!%p1537_p13)  }
  0xd6   : > { %874 = vmatprep.subr.bf16.mxu1 %v1795_v62  ;;  %v1862_v62 = vld [vmem:[#allocation10 + $0x20] sm:$0xff] (!%p1537_p13)  }
  0xd8   : > { %834 = vmatpush1.bf16.msra.mxu0 %v1797_v63  ;;  %v1837_v63 = vld [vmem:[#allocation9 + $0xa0] ss:$8 sps:$4 sm:$0xff] (!%p1537_p13)  }
  0xd9   : > { %875 = vmatpush1.bf16.msra.mxu1 %v1798_v0  ;;  %835 = vmatprep.subr.bf16.mxu0 %v1799_v1  ;;  %v1863_v0 = vld [vmem:[#allocation10 + $0x68] sm:$0xff] (!%p1537_p13)   ;;  %v1838_v1 = vld [vmem:[#allocation9 + $0xb4] ss:$8 sps:$4 sm:$0xff] (!%p1537_p13)  }
  0xda   : > { %876 = vmatprep.subr.bf16.mxu1 %v1801_v2  ;;  %v1864_v2 = vld [vmem:[#allocation10 + $0x28] sm:$0xff] (!%p1537_p13)  }
  0xdc   : > { %836 = vmatpush1.bf16.msra.mxu0 %v1803_v3  ;;  %v1840_v3 = vld [vmem:[#allocation9 + $0xb0] ss:$8 sps:$4 sm:$0xff] (!%p1537_p13)  }
  0xdd   : > { %877 = vmatpush1.bf16.msra.mxu1 %v1804_v4  ;;  %1119 = vmatprep.subr.bf16.mxu0 (!%p1537_p13), %v1805_v23  ;;  %v1841_v4 = vld [vmem:[#allocation9 + $0xc4] ss:$8 sps:$4 sm:$0xff] (!%p1537_p13)  }
  0xde   : > { %1594 = vmatprep.subr.bf16.mxu1 (!%p1537_p13), %v1853_v44 }
  0xdf   : > { %838 = vmatmul.mubr.bf16.vlgmr.msra.gmra.mrb[0].mxu0 %v417_v7  ;;  %v1844_v7 = vld [vmem:[#allocation9 + $0xd4] ss:$8 sps:$4 sm:$0xff] (!%p1537_p13)  }
  0xe0   : > { %879 = vmatmul.mubr.bf16.vlgmr.msra.gmra.mrb[0].mxu1 %v419_v8  ;;  %1120 = vmatpush1.bf16.msra.mxu0 (!%p1537_p13), %v1807_v24  ;;  %v902_v8 = vrot.slane (!%p1537_p13), %v897_v41, %v901_v5 }
  0xe1   : > { %1121 = vmatprep.subr.bf16.mxu0 (!%p1537_p13), %v1808_v25  ;;  %1595 = vmatpush3.bf16.msra.mxu1 (!%p1537_p13), %v1854_v46 }
  0xe2   : > { %1596 = vmatprep.subr.bf16.mxu1 (!%p1537_p13), %v1855_v48 }
  0xe4   : > { %1122 = vmatpush1.bf16.msra.mxu0 (!%p1537_p13), %v1810_v26 }
  0xe5   : > { %1123 = vmatprep.subr.bf16.mxu0 (!%p1537_p13), %v1811_v27  ;;  %1597 = vmatpush3.bf16.msra.mxu1 (!%p1537_p13), %v1856_v50 }
  0xe6   : > { %1598 = vmatprep.subr.bf16.mxu1 (!%p1537_p13), %v1857_v51 }
  0xe8   : > { %1124 = vmatpush1.bf16.msra.mxu0 (!%p1537_p13), %v1813_v28 }
  0xe9   : > { %1125 = vmatprep.subr.bf16.mxu0 (!%p1537_p13), %v1814_v29  ;;  %1599 = vmatpush3.bf16.msra.mxu1 (!%p1537_p13), %v1858_v55 }
  0xea   : > { %1600 = vmatprep.subr.bf16.mxu1 (!%p1537_p13), %v1859_v56 }
  0xec   : > { %1126 = vmatpush1.bf16.msra.mxu0 (!%p1537_p13), %v1816_v31 }
  0xed   : > { %1127 = vmatprep.subr.bf16.mxu0 (!%p1537_p13), %v1817_v32  ;;  %1601 = vmatpush3.bf16.msra.mxu1 (!%p1537_p13), %v1860_v60 }
  0xee   : > { %1602 = vmatprep.subr.bf16.mxu1 (!%p1537_p13), %v1861_v61 }
  0xf0   : > { %1128 = vmatpush1.bf16.msra.mxu0 (!%p1537_p13), %v1819_v34 }
  0xf1   : > { %1129 = vmatprep.subr.bf16.mxu0 (!%p1537_p13), %v1820_v35  ;;  %1603 = vmatpush3.bf16.msra.mxu1 (!%p1537_p13), %v1862_v62 }
  0xf2   : > { %1604 = vmatprep.subr.bf16.mxu1 (!%p1537_p13), %v1863_v0 }
  0xf4   : > { %1130 = vmatpush1.bf16.msra.mxu0 (!%p1537_p13), %v1822_v37 }
  0xf5   : > { %1131 = vmatprep.subr.bf16.mxu0 (!%p1537_p13), %v1823_v38  ;;  %1605 = vmatpush3.bf16.msra.mxu1 (!%p1537_p13), %v1864_v2  ;;  %v1570_v38 = vld [vmem:[%s2498_s7] ss:$0 sm:$0xff] (!%p1537_p13) }
  0xf8   : > { %1132 = vmatpush1.bf16.msra.mxu0 (!%p1537_p13), %v1825_v39 }
  0xf9   : > { %1133 = vmatprep.subr.bf16.mxu0 (!%p1537_p13), %v1826_v42 }
  0xfc   : > { %1134 = vmatpush1.bf16.msra.mxu0 (!%p1537_p13), %v1828_v47 }
  0xfd   : > { %1135 = vmatprep.subr.bf16.mxu0 (!%p1537_p13), %v1829_v52 }
 0x100   : > { %1136 = vmatpush1.bf16.msra.mxu0 (!%p1537_p13), %v1831_v54 }
 0x101   : > { %1137 = vmatprep.subr.bf16.mxu0 (!%p1537_p13), %v1832_v57 }
 0x104   : > { %1138 = vmatpush1.bf16.msra.mxu0 (!%p1537_p13), %v1834_v58 }
 0x105   : > { %1139 = vmatprep.subr.bf16.mxu0 (!%p1537_p13), %v1835_v59 }
 0x108   : > { %1140 = vmatpush1.bf16.msra.mxu0 (!%p1537_p13), %v1837_v63 }
 0x109   : > { %1141 = vmatprep.subr.bf16.mxu0 (!%p1537_p13), %v1838_v1 }
 0x10c   : > { %1142 = vmatpush1.bf16.msra.mxu0 (!%p1537_p13), %v1840_v3 }
 0x10d   : > { %1143 = vmatprep.subr.bf16.mxu0 (!%p1537_p13), %v1841_v4 }
 0x110   : > { %1144 = vmatpush1.bf16.msra.mxu0 (!%p1537_p13), %v1843_v6 }
 0x111   : > { %1145 = vmatprep.subr.bf16.mxu0 (!%p1537_p13), %v1844_v7 }
 0x1b2   : > { %v839_v9 = vpop.f32.mrb[0].mxu0 }
 0x1b3   : > { %v880_v11 = vpop.f32.mrb[0].mxu1  ;;  %v841_v13 = vpop.f32.mrb[1].mxu0  ;;  %894 = sbr.rel (%p1537_p13) target bundleno = 894 (0x37e), region = 76 }
 0x1b4   : > { %v881_v12 = vadd.f32 %v880_v11, %v839_v9  ;;  %v882_v15 = vpop.f32.mrb[1].mxu1  ;;  %v843_v17 = vpop.f32.mrb[2].mxu0  ;;  %v1846_v9 = vld [vmem:[#allocation9 + $0xd0] ss:$8 sps:$4 sm:$0xff] (!%p1537_p13)   ;;  %v1847_v11 = vld [vmem:[#allocation9 + $0xe4] ss:$8 sps:$4 sm:$0xff] (!%p1537_p13)  }
 0x1b5   : > { %v883_v16 = vadd.f32 %v882_v15, %v841_v13  ;;  %v884_v18 = vpop.f32.mrb[2].mxu1  ;;  %v844_v20 = vpop.f32.mrb[3].mxu0  ;;  %1146 = vmatpush1.bf16.msra.mxu0 (!%p1537_p13), %v1846_v9  ;;  %v1849_v13 = vld [vmem:[#allocation9 + $0xe0] ss:$8 sps:$4 sm:$0xff] (!%p1537_p13)  }
 0x1b6   : > { %v887_v19 = vadd.f32 %v881_v12, %v415_v10  ;;  %v885_v21 = vpop.f32.mrb[3].mxu1  ;;  %1147 = vmatprep.subr.bf16.mxu0 (!%p1537_p13), %v1847_v11  ;;  %v1865_v18 = vld [vmem:[#allocation10 + $0x70] sm:$0xff] (!%p1537_p13)   ;;  %v1867_v20 = vld [vmem:[#allocation10 + $0x78] sm:$0xff] (!%p1537_p13)  }
 0x1b7   : > { %v888_v22 = vadd.f32 %v883_v16, %v416_v14  ;;  %v1850_v14 = vld [vmem:[#allocation9 + $0xf4] ss:$8 sps:$4 sm:$0xff] (!%p1537_p13)   ;;  %v1852_v16 = vld [vmem:[#allocation9 + $0xf0] ss:$8 sps:$4 sm:$0xff] (!%p1537_p13)   ;;  %1606 = vmatprep.subr.bf16.mxu1 (!%p1537_p13), %v1865_v18 }
 0x1b8   : > { %889 = vst [vmem:[#allocation2] sm:$0xff] %v887_v19  ;;  %v1866_v19 = vld [vmem:[#allocation10 + $0x30] sm:$0xff] (!%p1537_p13)   ;;  %v1868_v21 = vld [vmem:[#allocation10 + $0x38] sm:$0xff] (!%p1537_p13)  }
 0x1b9   : > { %890 = vst [vmem:[#allocation2 + $0x8] sm:$0xff] %v888_v22  ;;  %1148 = vmatpush1.bf16.msra.mxu0 (!%p1537_p13), %v1849_v13  ;;  %1607 = vmatpush3.bf16.msra.mxu1 (!%p1537_p13), %v1866_v19  ;;  %v947_v22 = vld [vmem:[%s2496_s5] sm:$0x3] (!%p1537_p13) }
 0x1ba   : > { %1149 = vmatprep.subr.bf16.mxu0 %v1850_v14  ;;  %1608 = vmatprep.subr.bf16.mxu1 %v1867_v20  ;;  %v952_v23 = vrot.slane %v947_v22, %v901_v5  ;;  %v956_v24 = vrot.slane %v947_v22, %v905_v36 }
 0x1bd   : > { %1150 = vmatpush1.bf16.msra.mxu0 %v1852_v16  ;;  %1609 = vmatpush3.bf16.msra.mxu1 %v1868_v21 }
 0x1bf   : > { %v895_v10 = vld [vmem:[#allocation2] sm:$0xff] }
 0x1c0   : > { %v896_v40 = vld [vmem:[#allocation2 + $0x8] sm:$0xff]  ;;  %v909_v12 = vadd.f32 %v902_v8, %v895_v10 }
 0x1c1   : > { %v910_v45 = vadd.f32 %v906_v43, %v896_v40 }
 0x1c2   : > { %v911_v15 = vmax.f32 %v909_v12, 0.0 }
 0x1c3   : > { %v912_v49 = vmax.f32 %v910_v45, 0.0 }
 0x1c4   : > { %v913_v17 = vpack.c.bf16 %v911_v15, %v911_v15 }
 0x1c5   : > { %v914_v53 = vpack.c.bf16 %v912_v49, %v912_v49 }
 0x1c7   : > { %1151 = vmatprep.mubr.bf16.mxu0 %v914_v53 }
 0x1c8   : > { %1152 = vmatmul.mubr.bf16.vlgmr.msra.gmra.mrb[0].mxu0 %v913_v17 }
 0x29b   : > { %v1153_v25 = vpop.f32.mrb[0].mxu0 }
 0x29c   : > { %v1154_v26 = vadd.f32 %v1153_v25, %v952_v23  ;;  %v1155_v27 = vpop.f32.mrb[1].mxu0 }
 0x29d   : > { %v1156_v28 = vadd.f32 %v1155_v27, %v956_v24  ;;  %v1157_v29 = vpop.f32.mrb[2].mxu0 }
 0x29e   : > { %v1160_v30 = vmax.f32 %v1154_v26, 0.0  ;;  %v1158_v31 = vpop.f32.mrb[3].mxu0 }
 0x29f   : > { %v1161_v32 = vmax.f32 %v1156_v28, 0.0 }
 0x2a0   : > { %v1162_v35 = vpack.c.bf16 %v1160_v30, %v1160_v30 }
 0x2a1   : > { %v1163_v34 = vpack.c.bf16 %v1161_v32, %v1161_v32 }
 0x2a3   : > { %1331 = vmatprep.mubr.bf16.mxu1 %v1163_v34 }
 0x2a4   : > { %1332 = vmatmul.mubr.bf16.vlgmr.msra.gmra.mrb[0].mxu1 %v1162_v35 }
 0x377   : > { %v1610_v37 = vpop.f32.mrb[0].mxu1 }
 0x378   : > { %v1611_v39 = vpop.f32.mrb[1].mxu1 }
 0x379   : > { %v1612_v33 = vadd.f32 %v1611_v39, %v1610_v37  ;;  %v1613_v36 = vpop.f32.mrb[2].mxu1 }
 0x37a   : > { %v1614_v40 = vpop.f32.mrb[3].mxu1 }
 0x37b   : > { %v1334_v41 = vadd.f32 %v1612_v33, %v1570_v38 }
 0x37d   : > { %1339 = vst [vmem:[#allocation12] sm:$0xff] %v1334_v41 }
 0x37e PF: > { %p1651_p2 = scmp.eq.s32.totalorder %s2163_s10, 1  ;;  %s2088_s17 = smov [#allocation12]  }
 0x37f   : > { %s1349_s15 = sshll.u32 %s2088_s17, 4  ;;  %s1350_s15 = int_to_ptr.vmem [resolvable:$true] %s1349_s15 }
 0x380   : > { %s1985_s4 = scalar_lea.vmem %s1350_s15, 128  ;;  %p1992_p1 = scmp.lt.s32.totalorder %s1350_s15, %s1350_s15 }
 0x381   : > { %p1986_p3 = scmp.ne.s32.totalorder %s1350_s15, %s1985_s4  ;;  %p1993_p4 = scmp.lt.s32.totalorder %s1985_s4, %s1985_s4 }
 0x383   : > { %p1987_p0 = pnand %p1986_p3, %p1651_p2  ;;  %p1994_p12 = por %p1993_p4, %p1992_p1 }
 0x385   : > { %p1988_p6 = pneg %p1987_p0 }
 0x387   : > { %p1995_p9 = pnand %p1994_p12, %p1988_p6 }
 0x389   : > { %1998 = shalt.err (!%p1995_p9)
}
 0x38a   : > { %s1999_s24 = scalar_lea.hbm %s2499_s8, 128 }
 0x38b   : > { %p2000_p7 = scmp.ne.s32.totalorder %s2499_s8, %s1999_s24  ;;  %p2005_p10 = scmp.lt.u32.totalorder %s1999_s24, %s2499_s8 }
 0x38d   : > { %p2001_p5 = pnand %p2000_p7, %p1651_p2 }
 0x38f   : > { %p2002_p8 = pneg %p2001_p5 }
 0x391   : > { %p2007_p11 = pnand %p2005_p10, %p2002_p8 }
 0x393   : > { %2010 = shalt.err (!%p2007_p11)
}
 0x394   : > { %1629 = dma.vmem_to_hbm [thread:$0]  (%p1651_p2), %s1350_s15, 128, %s2499_s8, [#allocation6]  }
 0x395   : > { %2052 = dma.done.wait (%p1651_p2), [#allocation6], 128  }
 0x396   : > { %2054 = vsyncadd (%p1651_p2), [#allocation6], 4294967168 }
 0x397 PF: > { %s27_s9 = sadd.s32 1, %s2077_s9   ;;  %s2522_s26 = smov %s2061_s27 }
 0x398   : > { %p24_p13 = scmp.ge.s32.totalorder %s27_s9, 4   ;;  %s2523_s27 = smov %s2065_s28 }
 0x399   : > { %s2524_s28 = smov %s2255_s23  ;;  %s2525_s29 = smov %s2073_s30 }
 0x39a   : > { %s2526_s30 = smov %s2528_s19  ;;  %26 = sbr.rel (!%p24_p13) target bundleno = 11 (0xb), region = 119 }
 0x3a1   :  { %1362 = vsyncpa [#allocation5], 1 }
 0x3a2   :  { %1364 = vsyncpa [#allocation5 + $0x1], 1 }
 0x3a3   :  { %1365 = vsyncpa [#allocation8], 1 }
 0x3a4   :  { %1367 = vsyncpa [#allocation8 + $0x1], 1 }
 0x3a5   :  { %1368 = vsyncpa [#allocation11], 1 }
 0x3a6   :  { %1369 = vsyncpa [#allocation6], 1 }
 0x3a7   :  { %1371 = vsyncpa [#allocation6 + $0x1], 1 }

</bundles_post_ra>
